<compile_context>
chip_gen: v5e
topology: v5e:2x2
jax: 0.10.0
libtpu: 0.0.40
codegen_flags: <defaults>
</compile_context>

<pallas_src>
import jax
import jax.numpy as jnp
from jax.experimental import pallas as pl
from jax.experimental.pallas import tpu as pltpu

SUBLANE = 8  # f32 sublane rows


def coref_basic_kernel(x_ref, w1_ref, b1_ref, w2_ref, b2_ref, out_ref):
    # --- embed_to_hidden + ReLU (bf16 MXU matmul, f32 accumulate/elementwise) ---
    h = jnp.dot(x_ref[...], w1_ref[...], preferred_element_type=jnp.float32)
    h = jnp.maximum(h + b1_ref[...], 0.0)                     # (tm, H), f32

    # --- dropout ---
    # TODO(synk): training-mode stochastic dropout omitted; eval-mode dropout
    # is the identity, which is what we compute here.

    # --- hidden_to_logits (cast hidden to the bf16 weight dtype for the MXU) ---
    logits = jnp.dot(h.astype(w2_ref.dtype), w2_ref[...],
                     preferred_element_type=jnp.float32)
    logits = logits + b2_ref[...]                              # (tm, C), f32

    # --- softmax over dim=1 (class axis == last axis), exact normalization ---
    m = jnp.max(logits, axis=-1, keepdims=True)
    e = jnp.exp(logits - m)
    denom = jnp.sum(e, axis=-1, keepdims=True)
    out_ref[...] = (e / denom).astype(out_ref.dtype)


def _round_up(n, m):
    return pl.cdiv(n, m) * m


def coref_basic_forward(x, w1, b1, w2, b2, *, max_tile_m=1024,
                        matmul_dtype=jnp.bfloat16):
    """x: [B, F], w1: [F, H], b1: [H]/[1,H], w2: [H, C], b2: [C]/[1,C] -> [B, C]."""
    B, F = x.shape
    H = w1.shape[1]
    C = w2.shape[1]

    # Large row tile (amortize ~0.35us/step overhead) but keep >= 2 grid steps
    # so both v7x TensorCores get work; always a multiple of the 8-row sublane.
    tm = min(max_tile_m, max(SUBLANE, _round_up(pl.cdiv(B, 2), SUBLANE)))
    grid = (pl.cdiv(B, tm),)

    # bf16 inputs for the matmuls (halves the dominant HBM read stream);
    # biases and all post-matmul math stay f32.
    x_m = x.astype(matmul_dtype)
    w1_m = w1.astype(matmul_dtype)
    w2_m = w2.astype(matmul_dtype)
    b1_f = jnp.asarray(b1, jnp.float32).reshape(1, H)
    b2_f = jnp.asarray(b2, jnp.float32).reshape(1, C)

    bytes_in = 2 * (B * F + F * H + H * C) + 4 * (H + C)   # bf16 inputs, f32 bias
    bytes_out = 4 * B * C
    cost = pl.CostEstimate(
        flops=2 * B * (F * H + H * C),
        transcendentals=B * C,            # exp per logit
        bytes_accessed=bytes_in + bytes_out,
    )

    out = pl.pallas_call(
        coref_basic_kernel,
        out_shape=jax.ShapeDtypeStruct((B, C), jnp.float32),
        grid_spec=pltpu.PrefetchScalarGridSpec(
            num_scalar_prefetch=0,
            grid=grid,
            in_specs=[
                pl.BlockSpec((tm, F), lambda i: (i, 0)),   # X row tile (unpadded)
                pl.BlockSpec((F, H), lambda i: (0, 0)),    # W1 (VMEM-resident)
                pl.BlockSpec((1, H), lambda i: (0, 0)),    # b1 (VMEM-resident)
                pl.BlockSpec((H, C), lambda i: (0, 0)),    # W2 (VMEM-resident)
                pl.BlockSpec((1, C), lambda i: (0, 0)),    # b2 (VMEM-resident)
            ],
            out_specs=pl.BlockSpec((tm, C), lambda i: (i, 0)),  # narrow (B, C) out
        ),
        compiler_params=pltpu.CompilerParams(
            dimension_semantics=("parallel",),
        ),
        cost_estimate=cost,
    )(x_m, w1_m, b1_f, w2_m, b2_f)

    return out


if __name__ == "__main__":
    # Small shapes consistent with the module:
    #   n_features = len(X_data[0]) -> 32, hidden_size -> 32, n_classes -> 3
    B, F, H, C = 16, 32, 32, 3

    key = jax.random.PRNGKey(0)
    kx, kw1, kb1, kw2, kb2 = jax.random.split(key, 5)

    x = jax.random.normal(kx, (B, F), dtype=jnp.float32)
    # Deterministic "Linear"-style init (uniform in +/- 1/sqrt(fan_in)).
    w1 = jax.random.uniform(kw1, (F, H), jnp.float32, -1.0 / F**0.5, 1.0 / F**0.5)
    b1 = jax.random.uniform(kb1, (1, H), jnp.float32, -1.0 / F**0.5, 1.0 / F**0.5)
    w2 = jax.random.uniform(kw2, (H, C), jnp.float32, -1.0 / H**0.5, 1.0 / H**0.5)
    b2 = jax.random.uniform(kb2, (1, C), jnp.float32, -1.0 / H**0.5, 1.0 / H**0.5)

    out = coref_basic_forward(x, w1, b1, w2, b2)
    out = jax.block_until_ready(out)

    # Pure-JAX f32 reference (eval-mode dropout = identity).
    h_ref = jnp.maximum(x @ w1 + b1, 0.0)
    logits_ref = h_ref @ w2 + b2
    ref = jax.nn.softmax(logits_ref, axis=1)

    assert out.shape == (B, C)
    # bf16 matmul inputs -> small deviation from the f32 reference.
    assert jnp.allclose(out, ref, atol=2e-2, rtol=2e-2), "mismatch vs reference"
    # Exact per-row normalization -> rows sum to 1 to f32 precision.
    assert jnp.allclose(jnp.sum(out, axis=1), 1.0, atol=1e-4), \
        "softmax rows must sum to 1"

    print("KERNEL_OK")
</pallas_src>

<mosaic_0001>
module attributes {stable_mosaic.version = 11 : i64} {
  func.func @coref_basic_kernel(%arg0: i32, %arg1: memref<8x32xbf16, #tpu.memory_space<vmem>>, %arg2: memref<32x32xbf16, #tpu.memory_space<vmem>>, %arg3: memref<1x32xf32, #tpu.memory_space<vmem>>, %arg4: memref<32x3xbf16, #tpu.memory_space<vmem>>, %arg5: memref<1x3xf32, #tpu.memory_space<vmem>>, %arg6: memref<8x3xf32, #tpu.memory_space<vmem>>) attributes {dimension_semantics = [#tpu.dimension_semantics<parallel>], iteration_bounds = array<i64: 2>, scalar_prefetch = 0 : i64, scratch_operands = 0 : i64, tpu.core_type = #tpu.core_type<tc>, window_params = [{transform_indices = @transform_0, window_bounds = array<i64: 8, 32>}, {pipeline_mode = #tpu.pipeline_mode<synchronous>, transform_indices = @transform_1, window_bounds = array<i64: 32, 32>}, {pipeline_mode = #tpu.pipeline_mode<synchronous>, transform_indices = @transform_2, window_bounds = array<i64: 1, 32>}, {pipeline_mode = #tpu.pipeline_mode<synchronous>, transform_indices = @transform_3, window_bounds = array<i64: 32, 3>}, {pipeline_mode = #tpu.pipeline_mode<synchronous>, transform_indices = @transform_4, window_bounds = array<i64: 1, 3>}, {transform_indices = @transform_5, window_bounds = array<i64: 8, 3>}]} {
    %c0 = arith.constant 0 : index
    %c0_0 = arith.constant 0 : index
    %0 = vector.load %arg1[%c0, %c0_0] : memref<8x32xbf16, #tpu.memory_space<vmem>>, vector<8x32xbf16>
    %c0_1 = arith.constant 0 : index
    %c0_2 = arith.constant 0 : index
    %1 = vector.load %arg2[%c0_1, %c0_2] : memref<32x32xbf16, #tpu.memory_space<vmem>>, vector<32x32xbf16>
    %cst = arith.constant dense<0.000000e+00> : vector<8x32xf32>
    %2 = tpu.matmul %0, %1, %cst {dimension_numbers = #tpu.dot_dimension_numbers<[1], [0], [0], [1], [0, 0, 1, 1], [], []>} : vector<8x32xbf16>, vector<32x32xbf16>, vector<8x32xf32> -> vector<8x32xf32>
    %c0_3 = arith.constant 0 : index
    %c0_4 = arith.constant 0 : index
    %3 = vector.load %arg3[%c0_3, %c0_4] : memref<1x32xf32, #tpu.memory_space<vmem>>, vector<1x32xf32>
    %4 = vector.broadcast %3 : vector<1x32xf32> to vector<8x32xf32>
    %5 = arith.addf %2, %4 : vector<8x32xf32>
    %cst_5 = arith.constant 0.000000e+00 : f32
    %6 = vector.broadcast %cst_5 : f32 to vector<8x32xf32>
    %7 = arith.maximumf %5, %6 : vector<8x32xf32>
    %8 = arith.truncf %7 : vector<8x32xf32> to vector<8x32xbf16>
    %c0_6 = arith.constant 0 : index
    %c0_7 = arith.constant 0 : index
    %9 = vector.load %arg4[%c0_6, %c0_7] : memref<32x3xbf16, #tpu.memory_space<vmem>>, vector<32x3xbf16>
    %cst_8 = arith.constant dense<0.000000e+00> : vector<8x3xf32>
    %10 = tpu.matmul %8, %9, %cst_8 {dimension_numbers = #tpu.dot_dimension_numbers<[1], [0], [0], [1], [0, 0, 1, 1], [], []>} : vector<8x32xbf16>, vector<32x3xbf16>, vector<8x3xf32> -> vector<8x3xf32>
    %c0_9 = arith.constant 0 : index
    %c0_10 = arith.constant 0 : index
    %11 = vector.load %arg5[%c0_9, %c0_10] : memref<1x3xf32, #tpu.memory_space<vmem>>, vector<1x3xf32>
    %12 = vector.broadcast %11 : vector<1x3xf32> to vector<8x3xf32>
    %13 = arith.addf %10, %12 : vector<8x3xf32>
    %cst_11 = arith.constant dense<0xFF800000> : vector<8xf32>
    %14 = vector.multi_reduction <maximumf>, %13, %cst_11 [1] : vector<8x3xf32> to vector<8xf32>
    %15 = vector.shape_cast %14 : vector<8xf32> to vector<8x1xf32>
    %16 = vector.broadcast %15 : vector<8x1xf32> to vector<8x3xf32>
    %17 = arith.subf %13, %16 : vector<8x3xf32>
    %18 = math.exp %17 : vector<8x3xf32>
    %cst_12 = arith.constant dense<0.000000e+00> : vector<8xf32>
    %19 = vector.multi_reduction <add>, %18, %cst_12 [1] : vector<8x3xf32> to vector<8xf32>
    %20 = vector.shape_cast %19 : vector<8xf32> to vector<8x1xf32>
    %21 = vector.broadcast %20 : vector<8x1xf32> to vector<8x3xf32>
    %22 = arith.divf %18, %21 : vector<8x3xf32>
    %c0_13 = arith.constant 0 : index
    %c0_14 = arith.constant 0 : index
    %23 = vector.load %arg6[%c0_13, %c0_14] : memref<8x3xf32, #tpu.memory_space<vmem>>, vector<8x3xf32>
    tpu.vector_store %arg6[%c0_13, %c0_14], %22 {strides = array<i32>} : memref<8x3xf32, #tpu.memory_space<vmem>>, vector<8x3xf32>,
    return
  }
  func.func @transform_0(%arg0: i32) -> (i32, i32) {
    %c0_i32 = arith.constant 0 : i32
    %c0_i32_0 = arith.constant 0 : i32
    return %arg0, %c0_i32 : i32, i32
  }
  func.func @transform_1(%arg0: i32) -> (i32, i32) {
    %c0_i32 = arith.constant 0 : i32
    %c0_i32_0 = arith.constant 0 : i32
    %c0_i32_1 = arith.constant 0 : i32
    return %c0_i32, %c0_i32_0 : i32, i32
  }
  func.func @transform_2(%arg0: i32) -> (i32, i32) {
    %c0_i32 = arith.constant 0 : i32
    %c0_i32_0 = arith.constant 0 : i32
    %c0_i32_1 = arith.constant 0 : i32
    return %c0_i32, %c0_i32_0 : i32, i32
  }
  func.func @transform_3(%arg0: i32) -> (i32, i32) {
    %c0_i32 = arith.constant 0 : i32
    %c0_i32_0 = arith.constant 0 : i32
    %c0_i32_1 = arith.constant 0 : i32
    return %c0_i32, %c0_i32_0 : i32, i32
  }
  func.func @transform_4(%arg0: i32) -> (i32, i32) {
    %c0_i32 = arith.constant 0 : i32
    %c0_i32_0 = arith.constant 0 : i32
    %c0_i32_1 = arith.constant 0 : i32
    return %c0_i32, %c0_i32_0 : i32, i32
  }
  func.func @transform_5(%arg0: i32) -> (i32, i32) {
    %c0_i32 = arith.constant 0 : i32
    %c0_i32_0 = arith.constant 0 : i32
    return %arg0, %c0_i32 : i32, i32
  }
}

</mosaic_0001>

<bundles_post_ra>
// kernel: tpu_custom_call.1
= control target key start
LH: loop header
LB: loop body
LE: loop exit
PB: predicated region body
PF: predicated region fallthrough
CT: control target
= control target key end

     0   :  { %10 = vsyncpa [#allocation3], 0  ;;  %s698_s0 = inlined_call_operand.hbm [shape: bf16[16,32], index: 0, kind: input, shape index: {}]   ;;  %s699_s1 = inlined_call_operand.vmem [shape: bf16[32,32], index: 1, kind: input, shape index: {}]   ;;  %s700_s2 = inlined_call_operand.vmem [shape: f32[1,32], index: 2, kind: input, shape index: {}]   ;;  %s701_s3 = inlined_call_operand.vmem [shape: bf16[32,3], index: 3, kind: input, shape index: {}]   ;;  %s702_s4 = inlined_call_operand.vmem [shape: f32[1,3], index: 4, kind: input, shape index: {}]   ;;  %s703_s5 = inlined_call_operand.vmem [shape: f32[16,3], index: 5, kind: output, shape index: {}]  }
   0x1   :  { %12 = vsyncpa [#allocation3 + $0x1], 0  ;;  %s583_s18 = smov 0   ;;  %s585_s19 = smov 0  }
   0x2   :  { %s587_s20 = smov 0   ;;  %s589_s21 = smov 0  }
   0x3 LB: > { %s602_s22 = sadd.s32 4294967295, %s551_s21   ;;  %s605_s23 = sadd.s32 1, %s551_s21   ;;  %s551_s21 = sphi %s589_s21, %s710_s21   ;;  %s547_s20 = sphi %s587_s20, %s709_s20   ;;  %s543_s19 = sphi %s585_s19, %s708_s19   ;;  %s539_s18 = sphi %s583_s18, %s707_s18  }
   0x4   : > { %s22_s24 = ssub.s32 %s551_s21, %s605_s23  ;;  %s25_s25 = sadd.s32 1, %s547_s20 }
   0x5   : > { %p23_p0 = scmp.eq.s32.totalorder %s22_s24, 0  ;;  %p32_p1 = scmp.ne.s32.totalorder %s547_s20, %s543_s19 }
   0x6   : > { %p33_p2 = scmp.eq.s32.totalorder %s551_s21, 0  ;;  %p38_p3 = scmp.ne.s32.totalorder %s543_s19, %s539_s18 }
   0x7   : > { %s615_s26 = scalar_select %p23_p0, %s547_s20, %s25_s25  }
   0x8   : > { %p617_p4 = por %p33_p2, %p32_p1  ;;  %p39_p5 = scmp.eq.s32.totalorder %s602_s22, 0 }
   0x9   : > { %p448_p6 = scmp.lt.s32.totalorder %s551_s21, 2  ;;  %s184_s29 = sand.u32 1, %s547_s20  }
   0xa   : > { %p623_p7 = por %p39_p5, %p38_p3  ;;  %s413_s30 = sshll.u32 %s184_s29, 2 }
   0xb   : > { %s414_s6 = sshll.u32 %s551_s21, 2  ;;  %s188_s10 = scalar_lea.vmem [#allocation2], %s413_s30 }
   0xc   : > { %s192_s9 = scalar_lea.hbm %s698_s0, %s414_s6  ;;  %s196_s11 = sshll.u32 %s188_s10, 4  ;;  %s197_s11 = int_to_ptr.vmem [resolvable:$true] %s196_s11 }
   0xd   : > { %s194_s12 = sshll.u32 %s192_s9, 4  ;;  %p634_p8 = pnand %p448_p6, %p617_p4  ;;  %s195_s12 = int_to_ptr.hbm [resolvable:$true] %s194_s12 }
   0xe   : > { %p415_p9 = scmp.ge.s32.totalorder %s551_s21, 1  ;;  %p201_p10 = scmp.lt.s32.totalorder %s551_s21, 3 }
   0xf   : > { %s185_s14 = scalar_lea.sflag [#allocation3], %s184_s29  ;;  %s487_s15 = sshra.s32 %s195_s12, 4  ;;  %s488_s15 = int_to_ptr.hbm [resolvable:$true] %s487_s15 }
  0x10   : > { %s489_s16 = scalar_lea.hbm %s488_s15, 4  ;;  %p491_p12 = pneg %p634_p8 }
  0x11   : > { %p490_p11 = scmp.ne.s32.totalorder %s488_s15, %s489_s16  ;;  %s494_s24 = scalar_lea.hbm %s698_s0, 8 }
  0x12   : > { %p495_p1 = scmp.lt.s32.totalorder %s488_s15, %s698_s0  ;;  %p496_p2 = scmp.lt.s32.totalorder %s494_s24, %s489_s16 }
  0x13   : > { %p492_p13 = pnand %p491_p12, %p490_p11 }
  0x14   : > { %p497_p3 = por %p496_p2, %p495_p1 }
  0x15   : > { %p493_p0 = pneg %p492_p13 }
  0x17   : > { %p498_p4 = pnand %p497_p3, %p493_p0 }
  0x19   : > { %501 = shalt.err (!%p498_p4)
}
  0x1a   : > { %447 = dma.hbm_to_vmem [thread:$0]  (!%p634_p8), %s195_s12, 64, %s197_s11, %s185_s14  }
  0x1b   : > { %p202_p5 = pnand %p415_p9, %p201_p10 }
  0x1c   : > { %s207_s29 = sand.u32 (!%p202_p5), 1, %s543_s19  }
  0x1d   : > { %205 = sbr.rel (%p202_p5) target bundleno = 568 (0x238), region = 40  ;;  %s416_s30 = sshll.u32 (!%p202_p5), %s207_s29, 2 }
  0x1e   : > { %s208_s6 = scalar_lea.sflag (!%p202_p5), [#allocation3], %s207_s29  ;;  %s211_s7 = scalar_lea.vmem (!%p202_p5), [#allocation2], %s416_s30 }
  0x22   : > { %534 = dma.done.wait (%p623_p7), %s208_s6, 64  }
  0x23   : > { %536 = vsyncadd (%p623_p7), %s208_s6, 4294967232  ;;  %v439_v0 = vld [vmem:[%s699_s1 + $0x8] sm:$0xff]  ;;  %v438_v1 = vld [vmem:[%s699_s1] sm:$0xff]  ;;  %vm264_vm0 = vcmask 261120   ;;  %vm319_vm1 = vcmask 23552   ;;  %p238_p6 = scmp.lt.s32.totalorder %s602_s22, 1 }
  0x24   : > { %274 = vmatpush.bf16.msra.mxu0 %v439_v0  ;;  %v243_v2 = vld [vmem:[%s211_s7] sm:$0xf]  ;;  %v441_v3 = vld [vmem:[%s701_s3 + $0x8] sm:$0xff] }
  0x25   : > { %312 = vmatpush.bf16.msra.mxu1 %v441_v3  ;;  %v440_v4 = vld [vmem:[%s701_s3] sm:$0xff]  ;;  %s712_s22 = smov (!%p238_p6, %s602_s22), 1 }
  0x26   : > { %v481_v5 = vld [vmem:[%s700_s2] ss:$0 sm:$0xff]  ;;  %s417_s18 = sshll.u32 %s712_s22, 3 }
  0x27   : > { %v482_v11 = vld [vmem:[%s702_s4] ss:$0 sm:$0xff]  ;;  %s241_s27 = scalar_lea.vmem %s703_s5, %s417_s18 }
  0x28   : > { %275 = vmatpush.bf16.msra.mxu0 %v438_v1 }
  0x29   : > { %313 = vmatpush.bf16.msra.mxu1 %v440_v4 }
  0x2b   : > { %426 = vmatmul.msk.bf16.vlgmr.msra.gmra.mxu0 %vm264_vm0, %v243_v2 }
  0xa8   : > { %v277_v6 = vpop.f32.mrf.mxu0 }
  0xa9   : > { %v278_v7 = vadd.f32 %v481_v5, %v277_v6 }
  0xab   : > { %v281_v8 = vmax.f32 %v278_v7, 0.0 }
  0xad   : > { %v282_v9 = vpack.c.bf16 %v281_v8, %v281_v8 }
  0xaf   : > { %435 = vmatmul.msk.bf16.vlgmr.msra.gmra.mxu1 %vm264_vm0, %v282_v9 }
  0xb0   : > { %v279_v10 = vpop.f32.mrf.mxu0 }
 0x12c   : > { %v315_v12 = vpop.f32.mrf.mxu1 }
 0x12d   : > { %v316_v13 = vadd.f32 %v482_v11, %v315_v12 }
 0x12f   : > { %v320_v14 = vsel %vm319_vm1, %v316_v13, -inf }
 0x130   : > { %321 = vmax.xlane.f32.xlu0 %v320_v14 }
 0x134   : > { %v317_v15 = vpop.f32.mrf.mxu1 }
 0x1a3   : > { %v322_v16 = vpop.xlane.xlu0 %321 }
 0x1a4   : > { %v323_v17 = vsub.f32 %v316_v13, %v322_v16 }
 0x1a6   : > { %v324_v18 = vmul.f32 1.442695, %v323_v17 }
 0x1a8   : > { %483 = vpow2.f32 %v324_v18 }
 0x1ae   : > { %v484_v19 = vpop.eup %483 }
 0x1af   : > { %v326_v20 = vsel %vm319_vm1, %v484_v19, 0.0 }
 0x1b0   : > { %327 = vadd.xlane.f32.xlu0 %v326_v20 }
 0x223   : > { %v328_v21 = vpop.xlane.xlu0 %327 }
 0x224   : > { %485 = vrcp.f32 %v328_v21  ;;  %v340_v25 = vand.u32 2147483648, %v328_v21  ;;  %v338_v27 = vand.u32 2147483647, %v328_v21  ;;  %vm334_vm3 = vweird.f32 %v328_v21 }
 0x226   : > { %v341_v29 = vor.u32 1.1754944e-38, %v340_v25  ;;  %vm339_vm5 = vcmp.eq.f32.partialorder %v338_v27, 8.507059e+37 }
 0x22a   : > { %v486_v22 = vpop.eup %485 }
 0x22b   : > { %v330_v23 = vmul.f32 %v486_v22, %v328_v21  ;;  %vm335_vm2 = vweird.f32 %v486_v22 }
 0x22c   : > { %vm336_vm4 = vmor %vm334_vm3, %vm335_vm2 }
 0x22d   : > { %v331_v24 = vsub.f32 1.0, %v330_v23 }
 0x22f   : > { %v332_v26 = vmul.f32 %v486_v22, %v331_v24 }
 0x231   : > { %v333_v28 = vadd.f32 %v486_v22, %v332_v26 }
 0x233   : > { %v337_v30 = vsel %vm336_vm4, %v486_v22, %v333_v28 }
 0x234   : > { %v342_v31 = vsel %vm339_vm5, %v341_v29, %v337_v30 }
 0x235   : > { %v343_v32 = vmul.f32 %v484_v19, %v342_v31 }
 0x237   : > { %344 = vst.msk [vmem:[%s241_s27] sm:$0xff] %vm319_vm1, %v343_v32 }
 0x238 PF: > { %p15_p7 = scmp.ge.s32.totalorder %s605_s23, 4   ;;  %s707_s18 = smov %s543_s19 }
 0x239   : > { %s708_s19 = smov %s547_s20  ;;  %s709_s20 = smov %s615_s26 }
 0x23a   : > { %s710_s21 = smov %s605_s23  ;;  %17 = sbr.rel (!%p15_p7) target bundleno = 3 (0x3), region = 80 }
 0x23f   :  { %364 = vsyncpa [#allocation3], 1 }
 0x240   :  { %366 = vsyncpa [#allocation3 + $0x1], 1 }

</bundles_post_ra>
